<compile_context>
chip_gen: v7x
topology: tpu7x:2x2x1
jax: 0.10.0
libtpu: 0.0.40
codegen_flags: <defaults>
</compile_context>

<pallas_src>
import jax
import jax.numpy as jnp
from jax.experimental import pallas as pl
from jax.experimental.pallas import tpu as pltpu


def _round_up(v: int, m: int) -> int:
    return (v + m - 1) // m * m


def _gelu(x):
    # tanh-approx GELU (matches torch.nn.GELU(approximate="tanh") closely).
    c = jnp.sqrt(2.0 / jnp.pi).astype(x.dtype)
    return 0.5 * x * (1.0 + jnp.tanh(c * (x + 0.044715 * x * x * x)))


def make_parallel_kernel(num_branches: int, merge: str, weights, d_pad: int):
    """Kernel: one fused wide matmul for all branches on a row tile, then merge."""

    def kernel(x_ref, w_ref, b_ref, o_ref):
        x = x_ref[...]                                    # bf16 (tile_n, d_pad)
        # Single wide MXU matmul across all branches -> f32 (tile_n, nb*d_pad).
        h = jnp.dot(x, w_ref[...], preferred_element_type=jnp.float32)
        b = b_ref[...]                                    # f32 (1, nb*d_pad)

        if merge == "concat":
            # Wide result maps 1:1 onto the lane-dense output slab.
            o_ref[...] = _gelu(h + b).astype(o_ref.dtype)
            return

        # Fold branches into a single running accumulator over 128-aligned
        # lane slices (keeps ~2 tiles live instead of nb).
        acc = None
        for j in range(num_branches):                     # static, small fan-out
            lo, hi = j * d_pad, (j + 1) * d_pad
            gj = _gelu(h[:, lo:hi] + b[:, lo:hi])
            if merge == "add":
                if weights:
                    gj = jnp.float32(weights[j]) * gj
                acc = gj if acc is None else acc + gj
            elif merge == "multiply":
                acc = gj if acc is None else acc * gj
            elif merge == "mean":
                acc = gj if acc is None else acc + gj
            elif merge == "max":
                acc = gj if acc is None else jnp.maximum(acc, gj)
            else:
                raise ValueError(f"Unknown merge mode: {merge}")

        if merge == "mean":
            acc = acc * jnp.float32(1.0 / num_branches)
        o_ref[...] = acc.astype(o_ref.dtype)

    return kernel


def prepare_parallel_params(ws, bs):
    """One-time parameter prep: pad + cast + pack branch weights into one
    (d_pad, nb*d_pad) bf16 matrix and bias into a (1, nb*d_pad) f32 row."""
    nb, d, d2 = ws.shape
    assert d == d2 and bs.shape == (nb, d)
    d_pad = _round_up(d, 128)                 # lane-dense last dim (vreg/MXU)
    w_wide = jnp.zeros((d_pad, nb * d_pad), jnp.bfloat16)
    b_wide = jnp.zeros((1, nb * d_pad), jnp.float32)
    for j in range(nb):
        w_wide = w_wide.at[:d, j * d_pad:j * d_pad + d].set(
            ws[j].astype(jnp.bfloat16))
        b_wide = b_wide.at[0, j * d_pad:j * d_pad + d].set(
            bs[j].astype(jnp.float32))
    return {"w": w_wide, "b": b_wide, "nb": nb, "d": d, "d_pad": d_pad}


def parallel_module_forward(x, params, merge: str = "concat", weights=None,
                            tile_n: int = 256):
    """ParallelModule forward.

    x : [N, D] tokens.  params from prepare_parallel_params(ws, bs).
    branch_j(x) = gelu(x @ ws[j] + bs[j]);  outputs merged per `merge`.
    """
    w_wide, b_wide = params["w"], params["b"]
    nb, d, d_pad = params["nb"], params["d"], params["d_pad"]
    n = x.shape[0]
    assert x.shape[1] == d
    if merge == "add" and weights is not None:
        assert len(weights) == nb, "len(weights) must equal number of branches"

    # Row tile: sublane-aligned, and >=2 grid steps when N allows so the
    # 'parallel' axis actually feeds both TensorCores on v7x.
    n_pad8 = _round_up(n, 8)
    tile_n = min(tile_n, n_pad8)
    if n_pad8 >= 16 and pl.cdiv(n_pad8, tile_n) < 2:
        tile_n = _round_up(pl.cdiv(n_pad8, 2), 8)
    n_pad = pl.cdiv(n, tile_n) * tile_n

    # Pad/cast x once to bf16 (skip the copy entirely on aligned bf16 inputs).
    if n_pad == n and d_pad == d and x.dtype == jnp.bfloat16:
        x_p = x
    else:
        x_p = jnp.zeros((n_pad, d_pad), jnp.bfloat16).at[:n, :d].set(
            x.astype(jnp.bfloat16))

    d_out = nb * d_pad if merge == "concat" else d_pad
    out_dtype = x.dtype
    out_isz = jnp.dtype(out_dtype).itemsize
    grid = (n_pad // tile_n,)

    # VMEM capacity (v5e/v6e 128 MiB, v7x 64 MiB); leave headroom for Mosaic.
    try:
        vmem_cap = int(pltpu.get_tpu_info().vmem_capacity_bytes)
    except Exception:
        vmem_cap = 64 * 1024 * 1024

    kernel = make_parallel_kernel(nb, merge, weights, d_pad)

    def build_and_call(single_buffer_weights: bool):
        wbufs = 1 if single_buffer_weights else 2
        est = (2 * tile_n * d_pad * 2                 # bf16 x tiles (2x buffered)
               + wbufs * d_pad * nb * d_pad * 2       # bf16 fused weights
               + wbufs * nb * d_pad * 4               # f32 bias row
               + 2 * tile_n * d_out * out_isz         # out tiles (2x buffered)
               + tile_n * nb * d_pad * 4)             # f32 wide matmul slab
        vmem_limit = int(min(max(2 * est, 8 * 1024 * 1024),
                             int(0.8 * vmem_cap)))

        spec_kw = ({"pipeline_mode": pl.Buffered(1)}
                   if single_buffer_weights else {})
        w_spec = pl.BlockSpec((d_pad, nb * d_pad), lambda i: (0, 0), **spec_kw)
        b_spec = pl.BlockSpec((1, nb * d_pad), lambda i: (0, 0), **spec_kw)

        return pl.pallas_call(
            kernel,
            out_shape=jax.ShapeDtypeStruct((n_pad, d_out), out_dtype),
            grid_spec=pltpu.PrefetchScalarGridSpec(
                num_scalar_prefetch=0,
                grid=grid,
                in_specs=[
                    # streamed bf16 row tile of x
                    pl.BlockSpec((tile_n, d_pad), lambda i: (i, 0)),
                    # fused branch weights / bias, VMEM-resident
                    w_spec,
                    b_spec,
                ],
                out_specs=pl.BlockSpec((tile_n, d_out), lambda i: (i, 0)),
            ),
            compiler_params=pltpu.CompilerParams(
                dimension_semantics=("parallel",),  # shard row tiles across TCs
                vmem_limit_bytes=vmem_limit,
            ),
        )(x_p, w_wide, b_wide)

    try:
        out = jax.block_until_ready(build_and_call(True))
    except Exception:
        # Fallback if this JAX build rejects single-buffered pipeline_mode.
        out = jax.block_until_ready(build_and_call(False))

    # Slice padding back off.
    if merge == "concat":
        out = out[:n].reshape(n, nb, d_pad)[:, :, :d].reshape(n, nb * d)
    else:
        out = out[:n, :d]
    return out


def reference_forward(x, ws, bs, merge: str = "concat", weights=None):
    """Pure-JAX reference with the same bf16-operand / f32-accumulate numerics."""
    nb = ws.shape[0]
    xb = x.astype(jnp.bfloat16)
    outs = []
    for j in range(nb):
        h = jnp.dot(xb, ws[j].astype(jnp.bfloat16),
                    preferred_element_type=jnp.float32)
        h = h + bs[j].astype(jnp.float32)
        outs.append(_gelu(h))

    if merge == "concat":
        return jnp.concatenate(outs, axis=-1).astype(x.dtype)
    if merge == "add":
        if weights:
            acc = weights[0] * outs[0]
            for w, o in zip(weights[1:], outs[1:]):
                acc = acc + w * o
        else:
            acc = outs[0]
            for o in outs[1:]:
                acc = acc + o
    elif merge == "multiply":
        acc = outs[0]
        for o in outs[1:]:
            acc = acc * o
    elif merge == "mean":
        acc = jnp.mean(jnp.stack(outs), axis=0)
    elif merge == "max":
        acc = jnp.max(jnp.stack(outs), axis=0)
    else:
        raise ValueError(f"Unknown merge mode: {merge}")
    return acc.astype(x.dtype)


if __name__ == "__main__":
    # Small shapes implied by the forward: a batch of token embeddings shared
    # by several branches.
    batch, seq, hidden = 2, 8, 32
    num_branches = 3

    key = jax.random.PRNGKey(0)
    kx, kw, kb = jax.random.split(key, 3)

    x = jax.random.normal(kx, (batch, seq, hidden), dtype=jnp.float32)
    ws = jax.random.normal(kw, (num_branches, hidden, hidden),
                           dtype=jnp.float32) * (1.0 / jnp.sqrt(hidden))
    bs = jax.random.normal(kb, (num_branches, hidden), dtype=jnp.float32) * 0.01

    x2d = x.reshape(batch * seq, hidden)          # tokens-major [N, D]
    params = prepare_parallel_params(ws, bs)      # one-time weight prep

    cases = [
        ("concat", None),
        ("add", (0.5, 0.3, 0.2)),
        ("add", None),
        ("multiply", None),
        ("mean", None),
        ("max", None),
    ]
    for merge, weights in cases:
        out = jax.block_until_ready(
            parallel_module_forward(x2d, params, merge=merge, weights=weights))
        ref = reference_forward(x2d, ws, bs, merge=merge, weights=weights)
        exp_d = hidden * num_branches if merge == "concat" else hidden
        assert out.shape == (batch * seq, exp_d), f"bad shape for merge={merge}"
        assert jnp.allclose(out, ref, atol=1e-2, rtol=1e-2), \
            f"mismatch vs reference for merge={merge}"

    print("KERNEL_OK")
</pallas_src>

<mosaic_0001>
module attributes {stable_mosaic.version = 11 : i64} {
  func.func @kernel(%arg0: i32, %arg1: memref<8x128xbf16, #tpu.memory_space<vmem>>, %arg2: memref<128x384xbf16, #tpu.memory_space<vmem>>, %arg3: memref<1x384xf32, #tpu.memory_space<vmem>>, %arg4: memref<8x384xf32, #tpu.memory_space<vmem>>) attributes {dimension_semantics = [#tpu.dimension_semantics<parallel>], iteration_bounds = array<i64: 2>, scalar_prefetch = 0 : i64, scratch_operands = 0 : i64, tpu.core_type = #tpu.core_type<tc>, window_params = [{transform_indices = @transform_0, window_bounds = array<i64: 8, 128>}, {pipeline_mode = #tpu.pipeline_mode<synchronous>, transform_indices = @transform_1, window_bounds = array<i64: 128, 384>}, {pipeline_mode = #tpu.pipeline_mode<synchronous>, transform_indices = @transform_2, window_bounds = array<i64: 1, 384>}, {transform_indices = @transform_3, window_bounds = array<i64: 8, 384>}]} {
    %c0 = arith.constant 0 : index
    %c0_0 = arith.constant 0 : index
    %0 = vector.load %arg1[%c0, %c0_0] : memref<8x128xbf16, #tpu.memory_space<vmem>>, vector<8x128xbf16>
    %c0_1 = arith.constant 0 : index
    %c0_2 = arith.constant 0 : index
    %1 = vector.load %arg2[%c0_1, %c0_2] : memref<128x384xbf16, #tpu.memory_space<vmem>>, vector<128x384xbf16>
    %cst = arith.constant dense<0.000000e+00> : vector<8x384xf32>
    %2 = tpu.matmul %0, %1, %cst {dimension_numbers = #tpu.dot_dimension_numbers<[1], [0], [0], [1], [0, 0, 1, 1], [], []>} : vector<8x128xbf16>, vector<128x384xbf16>, vector<8x384xf32> -> vector<8x384xf32>
    %c0_3 = arith.constant 0 : index
    %c0_4 = arith.constant 0 : index
    %3 = vector.load %arg3[%c0_3, %c0_4] : memref<1x384xf32, #tpu.memory_space<vmem>>, vector<1x384xf32>
    %4 = vector.broadcast %3 : vector<1x384xf32> to vector<8x384xf32>
    %5 = arith.addf %2, %4 : vector<8x384xf32>
    %cst_5 = arith.constant 0.636619746 : f32
    %6 = math.sqrt %cst_5 : f32
    %cst_6 = arith.constant 5.000000e-01 : f32
    %7 = vector.broadcast %cst_6 : f32 to vector<8x384xf32>
    %8 = arith.mulf %7, %5 : vector<8x384xf32>
    %cst_7 = arith.constant 4.471500e-02 : f32
    %9 = vector.broadcast %cst_7 : f32 to vector<8x384xf32>
    %10 = arith.mulf %9, %5 : vector<8x384xf32>
    %11 = arith.mulf %10, %5 : vector<8x384xf32>
    %12 = arith.mulf %11, %5 : vector<8x384xf32>
    %13 = arith.addf %5, %12 : vector<8x384xf32>
    %14 = vector.broadcast %6 : f32 to vector<8x384xf32>
    %15 = arith.mulf %14, %13 : vector<8x384xf32>
    %16 = math.tanh %15 : vector<8x384xf32>
    %cst_8 = arith.constant 1.000000e+00 : f32
    %17 = vector.broadcast %cst_8 : f32 to vector<8x384xf32>
    %18 = arith.addf %17, %16 : vector<8x384xf32>
    %19 = arith.mulf %8, %18 : vector<8x384xf32>
    %c0_9 = arith.constant 0 : index
    %c0_10 = arith.constant 0 : index
    %20 = vector.load %arg4[%c0_9, %c0_10] : memref<8x384xf32, #tpu.memory_space<vmem>>, vector<8x384xf32>
    tpu.vector_store %arg4[%c0_9, %c0_10], %19 {strides = array<i32>} : memref<8x384xf32, #tpu.memory_space<vmem>>, vector<8x384xf32>,
    return
  }
  func.func @transform_0(%arg0: i32) -> (i32, i32) {
    %c0_i32 = arith.constant 0 : i32
    %c0_i32_0 = arith.constant 0 : i32
    return %arg0, %c0_i32 : i32, i32
  }
  func.func @transform_1(%arg0: i32) -> (i32, i32) {
    %c0_i32 = arith.constant 0 : i32
    %c0_i32_0 = arith.constant 0 : i32
    %c0_i32_1 = arith.constant 0 : i32
    return %c0_i32, %c0_i32_0 : i32, i32
  }
  func.func @transform_2(%arg0: i32) -> (i32, i32) {
    %c0_i32 = arith.constant 0 : i32
    %c0_i32_0 = arith.constant 0 : i32
    %c0_i32_1 = arith.constant 0 : i32
    return %c0_i32, %c0_i32_0 : i32, i32
  }
  func.func @transform_3(%arg0: i32) -> (i32, i32) {
    %c0_i32 = arith.constant 0 : i32
    %c0_i32_0 = arith.constant 0 : i32
    return %arg0, %c0_i32 : i32, i32
  }
}

module attributes {stable_mosaic.version = 11 : i64} {
  func.func @kernel(%arg0: i32, %arg1: memref<8x128xbf16, #tpu.memory_space<vmem>>, %arg2: memref<128x384xbf16, #tpu.memory_space<vmem>>, %arg3: memref<1x384xf32, #tpu.memory_space<vmem>>, %arg4: memref<8x384xf32, #tpu.memory_space<vmem>>) attributes {dimension_semantics = [#tpu.dimension_semantics<parallel>], iteration_bounds = array<i64: 2>, scalar_prefetch = 0 : i64, scratch_operands = 0 : i64, tpu.core_type = #tpu.core_type<tc>, window_params = [{transform_indices = @transform_0, window_bounds = array<i64: 8, 128>}, {pipeline_mode = #tpu.pipeline_mode<synchronous>, transform_indices = @transform_1, window_bounds = array<i64: 128, 384>}, {pipeline_mode = #tpu.pipeline_mode<synchronous>, transform_indices = @transform_2, window_bounds = array<i64: 1, 384>}, {transform_indices = @transform_3, window_bounds = array<i64: 8, 384>}]} {
    %c0 = arith.constant 0 : index
    %c0_0 = arith.constant 0 : index
    %0 = vector.load %arg1[%c0, %c0_0] : memref<8x128xbf16, #tpu.memory_space<vmem>>, vector<8x128xbf16>
    %c0_1 = arith.constant 0 : index
    %c0_2 = arith.constant 0 : index
    %1 = vector.load %arg2[%c0_1, %c0_2] : memref<128x384xbf16, #tpu.memory_space<vmem>>, vector<128x384xbf16>
    %cst = arith.constant dense<0.000000e+00> : vector<8x384xf32>
    %2 = tpu.matmul %0, %1, %cst {dimension_numbers = #tpu.dot_dimension_numbers<[1], [0], [0], [1], [0, 0, 1, 1], [], []>} : vector<8x128xbf16>, vector<128x384xbf16>, vector<8x384xf32> -> vector<8x384xf32>
    %c0_3 = arith.constant 0 : index
    %c0_4 = arith.constant 0 : index
    %3 = vector.load %arg3[%c0_3, %c0_4] : memref<1x384xf32, #tpu.memory_space<vmem>>, vector<1x384xf32>
    %4 = vector.broadcast %3 : vector<1x384xf32> to vector<8x384xf32>
    %5 = arith.addf %2, %4 : vector<8x384xf32>
    %cst_5 = arith.constant 0.636619746 : f32
    %6 = math.sqrt %cst_5 : f32
    %cst_6 = arith.constant 5.000000e-01 : f32
    %7 = vector.broadcast %cst_6 : f32 to vector<8x384xf32>
    %8 = arith.mulf %7, %5 : vector<8x384xf32>
    %cst_7 = arith.constant 4.471500e-02 : f32
    %9 = vector.broadcast %cst_7 : f32 to vector<8x384xf32>
    %10 = arith.mulf %9, %5 : vector<8x384xf32>
    %11 = arith.mulf %10, %5 : vector<8x384xf32>
    %12 = arith.mulf %11, %5 : vector<8x384xf32>
    %13 = arith.addf %5, %12 : vector<8x384xf32>
    %14 = vector.broadcast %6 : f32 to vector<8x384xf32>
    %15 = arith.mulf %14, %13 : vector<8x384xf32>
    %16 = math.tanh %15 : vector<8x384xf32>
    %cst_8 = arith.constant 1.000000e+00 : f32
    %17 = vector.broadcast %cst_8 : f32 to vector<8x384xf32>
    %18 = arith.addf %17, %16 : vector<8x384xf32>
    %19 = arith.mulf %8, %18 : vector<8x384xf32>
    %c0_9 = arith.constant 0 : index
    %c0_10 = arith.constant 0 : index
    %20 = vector.load %arg4[%c0_9, %c0_10] : memref<8x384xf32, #tpu.memory_space<vmem>>, vector<8x384xf32>
    tpu.vector_store %arg4[%c0_9, %c0_10], %19 {strides = array<i32>} : memref<8x384xf32, #tpu.memory_space<vmem>>, vector<8x384xf32>,
    return
  }
  func.func @transform_0(%arg0: i32) -> (i32, i32) {
    %c0_i32 = arith.constant 0 : i32
    %c0_i32_0 = arith.constant 0 : i32
    return %arg0, %c0_i32 : i32, i32
  }
  func.func @transform_1(%arg0: i32) -> (i32, i32) {
    %c0_i32 = arith.constant 0 : i32
    %c0_i32_0 = arith.constant 0 : i32
    %c0_i32_1 = arith.constant 0 : i32
    return %c0_i32, %c0_i32_0 : i32, i32
  }
  func.func @transform_2(%arg0: i32) -> (i32, i32) {
    %c0_i32 = arith.constant 0 : i32
    %c0_i32_0 = arith.constant 0 : i32
    %c0_i32_1 = arith.constant 0 : i32
    return %c0_i32, %c0_i32_0 : i32, i32
  }
  func.func @transform_3(%arg0: i32) -> (i32, i32) {
    %c0_i32 = arith.constant 0 : i32
    %c0_i32_0 = arith.constant 0 : i32
    return %arg0, %c0_i32 : i32, i32
  }
}

</mosaic_0001>

<bundles_post_ra>
// kernel: tpu_custom_call.1
= control target key start
LH: loop header
LB: loop body
LE: loop exit
PB: predicated region body
PF: predicated region fallthrough
CT: control target
= control target key end

     0   :  { %8 = vsyncpa [#allocation3], 0  ;;  %s1114_s0 = inlined_call_operand.hbm [shape: bf16[16,128], index: 0, kind: input, shape index: {}]   ;;  %s1115_s1 = inlined_call_operand.hbm [shape: bf16[128,384], index: 1, kind: input, shape index: {}]   ;;  %s1116_s2 = inlined_call_operand.vmem [shape: f32[1,384], index: 2, kind: input, shape index: {}]   ;;  %s1117_s3 = inlined_call_operand.hbm [shape: f32[16,384], index: 3, kind: output, shape index: {}]  }
   0x1   :  { %10 = vsyncpa [#allocation3 + $0x1], 0 }
   0x2   :  { %11 = vsyncpa [#allocation6], 0 }
   0x3   :  { %12 = vsyncpa [#allocation4], 0 }
   0x4   :  { %14 = vsyncpa [#allocation4 + $0x1], 0  ;;  %s911_s12 = smov 0   ;;  %s913_s13 = smov 0  }
   0x5   :  { %s915_s14 = smov 0   ;;  %s917_s15 = smov 0  }
   0x6 LB: > { %s932_s16 = sadd.s32 4294967295, %s881_s15   ;;  %s586_s17 = sadd.s32 4294967294, %s881_s15   ;;  %s881_s15 = sphi %s917_s15, %s1137_s15   ;;  %s877_s14 = sphi %s915_s14, %s1136_s14   ;;  %s873_s13 = sphi %s913_s13, %s1135_s13   ;;  %s869_s12 = sphi %s911_s12, %s1134_s12  }
   0x7   : > { %p40_p0 = scmp.ne.s32.totalorder %s873_s13, %s869_s12  ;;  %p1118_p1 = scmp.eq.s32.totalorder %s932_s16, 0 }
   0x8   : > { %p112_p3 = scmp.eq.s32.totalorder %s586_s17, 1  ;;  %p587_p5 = scmp.ge.s32.totalorder %s881_s15, 1 }
   0x9   : > { %p941_p4 = por %p1118_p1, %p40_p0  ;;  %p119_p7 = scmp.lt.s32.totalorder %s881_s15, 3 }
   0xa   : > { %p946_p6 = por %p112_p3, %p40_p0  ;;  %s883_s21 = smov [#allocation5]  }
   0xb   : > { %s1121_s18 = scalar_select %p941_p4, 1, 0 }
   0xc   : > { %s1122_s19 = scalar_select %p946_p6, 1, 0 }
   0xd   : > { %p951_p8 = pnand %p587_p5, %p119_p7  ;;  %s131_s22 = sshll.u32 %s883_s21, 4  ;;  %s955_s22 = int_to_ptr.vmem [resolvable:$true] %s131_s22 }
   0xe   : > { %s967_s24 = sadd.s32 1, %s881_s15   ;;  %s27_s25 = sadd.s32 1, %s877_s14 }
   0xf   : > { %s1123_s20 = scalar_select %p951_p8, 1, 0 }
  0x10   : > { %p661_p9 = pneg %p951_p8  ;;  %s24_s26 = ssub.s32 %s881_s15, %s967_s24 }
  0x11   : > { %s753_s29 = scalar_lea.hbm %s1115_s1, 3072 }
  0x12   : > { %p962_p11 = pnand %p661_p9, %p1118_p1  ;;  %p754_p12 = scmp.ne.s32.totalorder %s1115_s1, %s753_s29 }
  0x13   : > { %p760_p5 = scmp.lt.u32.totalorder %s753_s29, %s1115_s1 }
  0x14   : > { %p755_p13 = pneg %p962_p11 }
  0x16   : > { %p756_p0 = pnand %p755_p13, %p754_p12 }
  0x18   : > { %p757_p3 = pneg %p756_p0 }
  0x1a   : > { %p762_p7 = pnand %p760_p5, %p757_p3 }
  0x1c   : > { %765 = shalt.err (!%p762_p7)
}
  0x1d   : > { %s766_s7 = scalar_lea.vmem %s955_s22, 3072  ;;  %p774_p2 = scmp.lt.s32.totalorder %s955_s22, %s955_s22 }
  0x1e   : > { %p767_p9 = scmp.ne.s32.totalorder %s955_s22, %s766_s7  ;;  %p775_p6 = scmp.lt.s32.totalorder %s766_s7, %s766_s7 }
  0x20   : > { %p769_p10 = pnand %p767_p9, %p755_p13  ;;  %p776_p4 = por %p775_p6, %p774_p2 }
  0x22   : > { %p770_p1 = pneg %p769_p10 }
  0x24   : > { %p777_p8 = pnand %p776_p4, %p770_p1 }
  0x26   : > { %780 = shalt.err (!%p777_p8)
}
  0x27   : > { %s884_s8 = smov 192   ;;  %s885_s9 = smov 12  }
  0x28   : > { %664 = dma.hbm_to_vmem [thread:$0]  (!%p962_p11), %s1115_s1, 3072, %s955_s22, [#allocation6], %s884_s8, %s884_s8, %s885_s9  }
  0x29   : > { %p25_p2 = scmp.eq.s32.totalorder %s24_s26, 0  ;;  %p34_p1 = scmp.ne.s32.totalorder %s877_s14, %s873_s13 }
  0x2a   : > { %p35_p4 = scmp.eq.s32.totalorder %s881_s15, 0  ;;  %p674_p6 = scmp.lt.s32.totalorder %s881_s15, 2 }
  0x2b   : > { %s998_s17 = scalar_select %p25_p2, %s877_s14, %s27_s25  }
  0x2c   : > { %p36_p8 = por %p35_p4, %p34_p1  ;;  %p1125_p10 = scmp.eq.s32.totalorder %s932_s16, 1 }
  0x2d   : > { %s148_s27 = sand.u32 1, %s877_s14   ;;  %s591_s28 = sshll.u32 %s881_s15, 6 }
  0x2e   : > { %p1002_p12 = por %p1125_p10, %p34_p1  ;;  %s590_s29 = sshll.u32 %s148_s27, 2 }
  0x2f   : > { %s1011_s4 = scalar_lea.hbm %s1114_s0, %s591_s28  ;;  %s152_s22 = scalar_lea.vmem [#allocation2], %s590_s29 }
  0x30   : > { %s159_s25 = sshll.u32 %s152_s22, 4  ;;  %p1013_p11 = pnand %p674_p6, %p36_p8  ;;  %s1017_s25 = int_to_ptr.vmem [resolvable:$true] %s159_s25 }
  0x31   : > { %s149_s5 = scalar_lea.sflag [#allocation3], %s148_s27  ;;  %s781_s6 = scalar_lea.hbm %s1011_s4, 64 }
  0x32   : > { %p782_p13 = scmp.ne.s32.totalorder %s1011_s4, %s781_s6  ;;  %p783_p0 = pneg %p1013_p11 }
  0x33   : > { %s786_s9 = scalar_lea.hbm %s1114_s0, 128  ;;  %p787_p7 = scmp.lt.u32.totalorder %s1011_s4, %s1114_s0 }
  0x34   : > { %p784_p3 = pnand %p783_p0, %p782_p13  ;;  %p788_p9 = scmp.lt.u32.totalorder %s786_s9, %s781_s6 }
  0x35   : > { %p790_p1 = scmp.lt.u32.totalorder %s781_s6, %s1011_s4 }
  0x36   : > { %p785_p5 = pneg %p784_p3  ;;  %p789_p2 = por %p788_p9, %p787_p7 }
  0x38   : > { %p791_p4 = por %p790_p1, %p789_p2 }
  0x3a   : > { %p792_p6 = pnand %p791_p4, %p785_p5 }
  0x3c   : > { %795 = shalt.err (!%p792_p6)
}
  0x3d   : > { %s796_s27 = scalar_lea.vmem %s1017_s25, 64  ;;  %s886_s28 = smov [#allocation2]  }
  0x3e   : > { %p797_p8 = scmp.ne.s32.totalorder %s1017_s25, %s796_s27  ;;  %s801_s29 = sshll.u32 %s886_s28, 4  ;;  %s802_s29 = int_to_ptr.vmem [resolvable:$false] %s801_s29 }
  0x3f   : > { %s803_s23 = scalar_lea.vmem %s802_s29, 128  ;;  %p804_p3 = scmp.lt.s32.totalorder %s1017_s25, %s802_s29 }
  0x40   : > { %p799_p10 = pnand %p797_p8, %p783_p0  ;;  %p805_p7 = scmp.lt.s32.totalorder %s803_s23, %s796_s27 }
  0x42   : > { %p800_p13 = pneg %p799_p10  ;;  %p806_p9 = por %p805_p7, %p804_p3 }
  0x44   : > { %p807_p2 = pnand %p806_p9, %p800_p13 }
  0x46   : > { %810 = shalt.err (!%p807_p2)
}
  0x47   : > { %668 = dma.hbm_to_vmem [thread:$0]  (!%p1013_p11), %s1011_s4, 64, %s1017_s25, %s149_s5  }
  0x48   : > { %p1128_p5 = scmp.ne.s32.totalorder %s1123_s20, 0 }
  0x49   : > { %s1047_s30 = sand.u32 (!%p1128_p5), 1, %s873_s13   ;;  %p1129_p0 = scmp.ne.s32.totalorder (!%p1128_p5), %s1121_s18, 0 }
  0x4a   : > { %168 = sbr.rel (%p1128_p5) target bundleno = 374 (0x176), region = 32  ;;  %s593_s22 = sshll.u32 (!%p1128_p5), %s1047_s30, 2 }
  0x4b   : > { %s171_s6 = scalar_lea.sflag (!%p1128_p5), [#allocation3], %s1047_s30  ;;  %s1051_s7 = scalar_lea.vmem (!%p1128_p5), [#allocation2], %s593_s22 }
  0x51   : > { %856 = dma.done.wait (%p1129_p0), %s171_s6, 64  }
  0x52   : > { %858 = vsyncadd (%p1129_p0), %s171_s6, 4294967232  ;;  %p1130_p11 = scmp.eq.s32.totalorder %s932_s16, 0 }
  0x54   : > { %860 = dma.done.wait (%p1130_p11), [#allocation6], 3072   ;;  %p1131_p1 = pmov %p1130_p11 }
  0x55   : > { %v887_v0 = vmov 0.0   ;;  %vm888_vm0 = vmmov 0   ;;  %v889_v1 = vmov 0   ;;  %v715_v2 = vld [vmem:[#allocation5 + $0x4] ss:$12 sps:$4 sm:$0xff]   ;;  %v237_v27 = vlaneseq  ;;  %s651_s4 = smul.u32 24, %s1047_s30 }
  0x56   : > { %862 = vsyncadd (%p1131_p1), [#allocation6], 4294964224  ;;  %631 = vmatprep.subr.bf16.mxu1 %v887_v0  ;;  %647 = vmatprep.mubr.msk.bf16.mxu1 %vm888_vm0, %v887_v0  ;;  %v717_v3 = vld [vmem:[#allocation5 + $0x8] ss:$12 sps:$4 sm:$0xff]   ;;  %v718_v4 = vld [vmem:[#allocation5] ss:$12 sps:$4 sm:$0xff]  }
  0x57   : > { %412 = vmatprep.mubr.bf16.mxu0 %v889_v1  ;;  %380 = vmatprep.subr.bf16.mxu0 %v715_v2  ;;  %v719_v5 = vld [vmem:[#allocation5 + $0x1c] ss:$12 sps:$4 sm:$0xff]   ;;  %v721_v6 = vld [vmem:[#allocation5 + $0x20] ss:$12 sps:$4 sm:$0xff]   ;;  %v722_v7 = vld [vmem:[#allocation5 + $0x18] ss:$12 sps:$4 sm:$0xff]  }
  0x58   : > { %632 = vmatpush3.bf16.msra.mxu1 %v717_v3  ;;  %381 = vmatpush1.bf16.msra.mxu0 %v718_v4  ;;  %v723_v8 = vld [vmem:[#allocation5 + $0x34] ss:$12 sps:$4 sm:$0xff]   ;;  %v725_v9 = vld [vmem:[#allocation5 + $0x38] ss:$12 sps:$4 sm:$0xff]   ;;  %v726_v10 = vld [vmem:[#allocation5 + $0x30] ss:$12 sps:$4 sm:$0xff]  }
  0x59   : > { %633 = vmatprep.subr.bf16.mxu1 %v887_v0  ;;  %382 = vmatprep.subr.bf16.mxu0 %v719_v5  ;;  %v727_v11 = vld [vmem:[#allocation5 + $0x4c] ss:$12 sps:$4 sm:$0xff]   ;;  %v729_v12 = vld [vmem:[#allocation5 + $0x50] ss:$12 sps:$4 sm:$0xff]   ;;  %v730_v13 = vld [vmem:[#allocation5 + $0x48] ss:$12 sps:$4 sm:$0xff]  }
  0x5a   : > { %v731_v14 = vld [vmem:[#allocation5 + $0x64] ss:$12 sps:$4 sm:$0xff]   ;;  %v733_v15 = vld [vmem:[#allocation5 + $0x68] ss:$12 sps:$4 sm:$0xff]   ;;  %v734_v16 = vld [vmem:[#allocation5 + $0x60] ss:$12 sps:$4 sm:$0xff]  }
  0x5b   : > { %v735_v17 = vld [vmem:[#allocation5 + $0x7c] ss:$12 sps:$4 sm:$0xff]   ;;  %v737_v18 = vld [vmem:[#allocation5 + $0x80] ss:$12 sps:$4 sm:$0xff]   ;;  %v738_v19 = vld [vmem:[#allocation5 + $0x78] ss:$12 sps:$4 sm:$0xff]  }
  0x5c   : > { %634 = vmatpush3.bf16.msra.mxu1 %v721_v6  ;;  %383 = vmatpush1.bf16.msra.mxu0 %v722_v7  ;;  %v739_v20 = vld [vmem:[#allocation5 + $0x94] ss:$12 sps:$4 sm:$0xff]   ;;  %v741_v21 = vld [vmem:[#allocation5 + $0x98] ss:$12 sps:$4 sm:$0xff]   ;;  %v742_v22 = vld [vmem:[#allocation5 + $0x90] ss:$12 sps:$4 sm:$0xff]  }
  0x5d   : > { %635 = vmatprep.subr.bf16.mxu1 %v887_v0  ;;  %384 = vmatprep.subr.bf16.mxu0 %v723_v8  ;;  %v743_v23 = vld [vmem:[#allocation5 + $0xac] ss:$12 sps:$4 sm:$0xff]   ;;  %v745_v24 = vld [vmem:[#allocation5 + $0xb0] ss:$12 sps:$4 sm:$0xff]   ;;  %v746_v25 = vld [vmem:[#allocation5 + $0xa8] ss:$12 sps:$4 sm:$0xff]  }
  0x5e   : > { %v202_v26 = vld [vmem:[%s1051_s7] sm:$0xf]  ;;  %v238_v28 = vshrl.u32 %v237_v27, 7  ;;  %s652_s25 = smul.u32 384, %s932_s16  ;;  %s200_s26 = scalar_lea.vmem [#allocation7], %s651_s4 }
  0x5f   : > { %v235_v30 = vld [vmem:[%s1116_s2] sm:$0x7]  ;;  %s506_s5 = sshll.u32 %s200_s26, 4  ;;  %s492_s16 = scalar_lea.sflag [#allocation4], %s1047_s30  ;;  %s1072_s5 = int_to_ptr.vmem [resolvable:$true] %s506_s5 }
  0x60   : > { %636 = vmatpush3.bf16.msra.mxu1 %v725_v9  ;;  %385 = vmatpush1.bf16.msra.mxu0 %v726_v10  ;;  %v247_v29 = vsub.s32 2, %v238_v28  ;;  %v239_v31 = vsub.s32 0, %v238_v28  ;;  %v243_v32 = vsub.s32 1, %v238_v28  ;;  %s1070_s10 = scalar_lea.hbm %s1117_s3, %s652_s25  ;;  %s811_s11 = scalar_lea.vmem %s1072_s5, 384 }
  0x61   : > { %637 = vmatprep.subr.bf16.mxu1 %v887_v0  ;;  %386 = vmatprep.subr.bf16.mxu0 %v727_v11  ;;  %p812_p4 = scmp.ne.s32.totalorder %s1072_s5, %s811_s11  ;;  %s890_s27 = smov [#allocation7]  }
  0x62   : > { %v248_v33 = vrot.slane %v235_v30, %v247_v29  ;;  %v240_v34 = vrot.slane %v235_v30, %v239_v31  ;;  %v244_v35 = vrot.slane %v235_v30, %v243_v32  ;;  %s815_s28 = sshll.u32 %s890_s27, 4  ;;  %s816_s28 = int_to_ptr.vmem [resolvable:$false] %s815_s28 }
  0x63   : > { %p813_p6 = pnand %p812_p4, %p1002_p12  ;;  %s817_s29 = scalar_lea.vmem %s816_s28, 768 }
  0x64   : > { %638 = vmatpush3.bf16.msra.mxu1 %v729_v12  ;;  %387 = vmatpush1.bf16.msra.mxu0 %v730_v13  ;;  %p818_p10 = scmp.lt.s32.totalorder %s1072_s5, %s816_s28  ;;  %p819_p13 = scmp.lt.s32.totalorder %s817_s29, %s811_s11 }
  0x65   : > { %639 = vmatprep.subr.bf16.mxu1 %v887_v0  ;;  %388 = vmatprep.subr.bf16.mxu0 %v731_v14  ;;  %p814_p8 = pneg %p813_p6 }
  0x66   : > { %p820_p3 = por %p819_p13, %p818_p10 }
  0x68   : > { %640 = vmatpush3.bf16.msra.mxu1 %v733_v15  ;;  %389 = vmatpush1.bf16.msra.mxu0 %v734_v16  ;;  %p821_p7 = pnand %p820_p3, %p814_p8 }
  0x69   : > { %641 = vmatprep.subr.bf16.mxu1 %v887_v0  ;;  %390 = vmatprep.subr.bf16.mxu0 %v735_v17 }
  0x6c   : > { %642 = vmatpush3.bf16.msra.mxu1 %v737_v18  ;;  %391 = vmatpush1.bf16.msra.mxu0 %v738_v19 }
  0x6d   : > { %643 = vmatprep.subr.bf16.mxu1 %v887_v0  ;;  %392 = vmatprep.subr.bf16.mxu0 %v739_v20 }
  0x70   : > { %644 = vmatpush3.bf16.msra.mxu1 %v741_v21  ;;  %393 = vmatpush1.bf16.msra.mxu0 %v742_v22 }
  0x71   : > { %645 = vmatprep.subr.bf16.mxu1 %v887_v0  ;;  %394 = vmatprep.subr.bf16.mxu0 %v743_v23 }
  0x74   : > { %646 = vmatpush3.bf16.msra.mxu1 %v745_v24  ;;  %395 = vmatpush1.bf16.msra.mxu0 %v746_v25 }
  0x77   : > { %648 = vmatmul.mubr.bf16.vlgmr.msra.gmra.mrb[0].mxu1 %v202_v26  ;;  %413 = vmatmul.mubr.bf16.vlgmr.msra.gmra.mrb[0].mxu0 %v202_v26 }
 0x14a   : > { %v455_v36 = vpop.f32.mrb[0].mxu1  ;;  %v414_v38 = vpop.f32.mrb[0].mxu0 }
 0x14b   : > { %v456_v37 = vadd.f32 %v455_v36, %v248_v33  ;;  %v649_v39 = vpop.f32.mrb[1].mxu1  ;;  %v415_v40 = vadd.f32 %v414_v38, %v240_v34  ;;  %v416_v41 = vpop.f32.mrb[1].mxu0 }
 0x14c   : > { %v458_v42 = vpop.f32.mrb[2].mxu1  ;;  %v417_v44 = vadd.f32 %v416_v41, %v244_v35  ;;  %v418_v45 = vpop.f32.mrb[2].mxu0 }
 0x14d   : > { %v466_v43 = vmul.f32 0.044715, %v456_v37  ;;  %v650_v46 = vpop.f32.mrb[3].mxu1  ;;  %v464_v47 = vmul.f32 0.044715, %v415_v40  ;;  %v419_v48 = vpop.f32.mrb[3].mxu0 }
 0x14e   : > { %v465_v50 = vmul.f32 0.044715, %v417_v44  ;;  %v463_v0 = vmul.f32 0.5, %v456_v37  ;;  %v461_v3 = vmul.f32 0.5, %v415_v40  ;;  %v462_v6 = vmul.f32 0.5, %v417_v44 }
 0x14f   : > { %v469_v49 = vmul.f32 %v466_v43, %v456_v37  ;;  %v467_v51 = vmul.f32 %v464_v47, %v415_v40 }
 0x150   : > { %v468_v53 = vmul.f32 %v465_v50, %v417_v44 }
 0x151   : > { %v472_v52 = vmul.f32 %v469_v49, %v456_v37  ;;  %v470_v54 = vmul.f32 %v467_v51, %v415_v40 }
 0x152   : > { %v471_v56 = vmul.f32 %v468_v53, %v417_v44 }
 0x153   : > { %v475_v55 = vadd.f32 %v472_v52, %v456_v37  ;;  %v473_v57 = vadd.f32 %v470_v54, %v415_v40 }
 0x154   : > { %v474_v59 = vadd.f32 %v471_v56, %v417_v44 }
 0x155   : > { %v478_v58 = vmul.f32 0.7978845, %v475_v55  ;;  %v476_v60 = vmul.f32 0.7978845, %v473_v57 }
 0x156   : > { %v477_v61 = vmul.f32 0.7978845, %v474_v59 }
 0x157   : > { %747 = vtanh.f32 %v478_v58 }
 0x158   : > { %749 = vtanh.f32 %v476_v60 }
 0x159   : > { %751 = vtanh.f32 %v477_v61 }
 0x161   : > { %v748_v62 = vpop.eup %747 }
 0x162   : > { %v750_v63 = vpop.eup %749  ;;  %v484_v1 = vadd.f32 1.0, %v748_v62 }
 0x163   : > { %v752_v2 = vpop.eup %751  ;;  %v482_v4 = vadd.f32 1.0, %v750_v63 }
 0x164   : > { %v487_v5 = vmul.f32 %v484_v1, %v463_v0  ;;  %v483_v7 = vadd.f32 1.0, %v752_v2 }
 0x165   : > { %v485_v8 = vmul.f32 %v482_v4, %v461_v3 }
 0x166   : > { %v486_v9 = vmul.f32 %v483_v7, %v462_v6  ;;  %490 = vst [vmem:[%s200_s26 + $0x10] sm:$0xff] %v487_v5 }
 0x167   : > { %488 = vst [vmem:[%s200_s26] sm:$0xff] %v485_v8 }
 0x168   : > { %489 = vst [vmem:[%s200_s26 + $0x8] sm:$0xff] %v486_v9 }
 0x169   : > { %824 = shalt.err (!%p821_p7)
}
 0x16a   : > { %s825_s23 = scalar_lea.hbm %s1070_s10, 384  ;;  %s829_s6 = scalar_lea.hbm %s1117_s3, 768 }
 0x16b   : > { %p826_p9 = scmp.ne.s32.totalorder %s1070_s10, %s825_s23  ;;  %p830_p0 = scmp.lt.u32.totalorder %s1070_s10, %s1117_s3 }
 0x16c   : > { %p831_p11 = scmp.lt.u32.totalorder %s829_s6, %s825_s23  ;;  %p833_p4 = scmp.lt.u32.totalorder %s825_s23, %s1070_s10 }
 0x16d   : > { %p827_p2 = pnand %p826_p9, %p1002_p12 }
 0x16e   : > { %p832_p1 = por %p831_p11, %p830_p0 }
 0x16f   : > { %p828_p5 = pneg %p827_p2 }
 0x170   : > { %p834_p6 = por %p833_p4, %p832_p1 }
 0x172   : > { %p835_p8 = pnand %p834_p6, %p828_p5 }
 0x174   : > { %838 = shalt.err (!%p835_p8)
}
 0x175   : > { %659 = dma.vmem_to_hbm [thread:$0]  (%p1002_p12), %s1072_s5, 384, %s1070_s10, %s492_s16  }
 0x176 PF: > { %s518_s20 = sand.u32 1, %s869_s12   ;;  %p1132_p10 = scmp.ne.s32.totalorder %s1122_s19, 0 }
 0x177   : > { %p1133_p13 = scmp.ge.s32.totalorder %s881_s15, 2  ;;  %s519_s4 = scalar_lea.sflag [#allocation4], %s518_s20 }
 0x179   : > { %p670_p3 = pnand %p1133_p13, %p1132_p10 }
 0x17b   : > { %864 = dma.done.wait (!%p670_p3), %s519_s4, 384  }
 0x17c   : > { %866 = vsyncadd (!%p670_p3), %s519_s4, 4294966912  ;;  %p17_p7 = scmp.ge.s32.totalorder %s967_s24, 4   ;;  %s1134_s12 = smov %s873_s13 }
 0x17d   : > { %s1135_s13 = smov %s877_s14  ;;  %s1136_s14 = smov %s998_s17 }
 0x17e   : > { %s1137_s15 = smov %s967_s24  ;;  %19 = sbr.rel (!%p17_p7) target bundleno = 6 (0x6), region = 81 }
 0x185   :  { %524 = vsyncpa [#allocation3], 1 }
 0x186   :  { %526 = vsyncpa [#allocation3 + $0x1], 1 }
 0x187   :  { %527 = vsyncpa [#allocation6], 1 }
 0x188   :  { %528 = vsyncpa [#allocation4], 1 }
 0x189   :  { %530 = vsyncpa [#allocation4 + $0x1], 1 }

// kernel: tpu_custom_call.1
= control target key start
LH: loop header
LB: loop body
LE: loop exit
PB: predicated region body
PF: predicated region fallthrough
CT: control target
= control target key end

     0   :  { %8 = vsyncpa [#allocation3], 0  ;;  %s1114_s0 = inlined_call_operand.hbm [shape: bf16[16,128], index: 0, kind: input, shape index: {}]   ;;  %s1115_s1 = inlined_call_operand.hbm [shape: bf16[128,384], index: 1, kind: input, shape index: {}]   ;;  %s1116_s2 = inlined_call_operand.vmem [shape: f32[1,384], index: 2, kind: input, shape index: {}]   ;;  %s1117_s3 = inlined_call_operand.hbm [shape: f32[16,384], index: 3, kind: output, shape index: {}]  }
   0x1   :  { %10 = vsyncpa [#allocation3 + $0x1], 0 }
   0x2   :  { %11 = vsyncpa [#allocation6], 0 }
   0x3   :  { %12 = vsyncpa [#allocation4], 0 }
   0x4   :  { %14 = vsyncpa [#allocation4 + $0x1], 0  ;;  %s911_s12 = smov 0   ;;  %s913_s13 = smov 0  }
   0x5   :  { %s915_s14 = smov 0   ;;  %s917_s15 = smov 0  }
   0x6 LB: > { %s932_s16 = sadd.s32 4294967295, %s881_s15   ;;  %s586_s17 = sadd.s32 4294967294, %s881_s15   ;;  %s881_s15 = sphi %s917_s15, %s1137_s15   ;;  %s877_s14 = sphi %s915_s14, %s1136_s14   ;;  %s873_s13 = sphi %s913_s13, %s1135_s13   ;;  %s869_s12 = sphi %s911_s12, %s1134_s12  }
   0x7   : > { %p40_p0 = scmp.ne.s32.totalorder %s873_s13, %s869_s12  ;;  %p1118_p1 = scmp.eq.s32.totalorder %s932_s16, 0 }
   0x8   : > { %p112_p3 = scmp.eq.s32.totalorder %s586_s17, 1  ;;  %p587_p5 = scmp.ge.s32.totalorder %s881_s15, 1 }
   0x9   : > { %p941_p4 = por %p1118_p1, %p40_p0  ;;  %p119_p7 = scmp.lt.s32.totalorder %s881_s15, 3 }
   0xa   : > { %p946_p6 = por %p112_p3, %p40_p0  ;;  %s883_s21 = smov [#allocation5]  }
   0xb   : > { %s1121_s18 = scalar_select %p941_p4, 1, 0 }
   0xc   : > { %s1122_s19 = scalar_select %p946_p6, 1, 0 }
   0xd   : > { %p951_p8 = pnand %p587_p5, %p119_p7  ;;  %s131_s22 = sshll.u32 %s883_s21, 4  ;;  %s955_s22 = int_to_ptr.vmem [resolvable:$true] %s131_s22 }
   0xe   : > { %s967_s24 = sadd.s32 1, %s881_s15   ;;  %s27_s25 = sadd.s32 1, %s877_s14 }
   0xf   : > { %s1123_s20 = scalar_select %p951_p8, 1, 0 }
  0x10   : > { %p661_p9 = pneg %p951_p8  ;;  %s24_s26 = ssub.s32 %s881_s15, %s967_s24 }
  0x11   : > { %s753_s29 = scalar_lea.hbm %s1115_s1, 3072 }
  0x12   : > { %p962_p11 = pnand %p661_p9, %p1118_p1  ;;  %p754_p12 = scmp.ne.s32.totalorder %s1115_s1, %s753_s29 }
  0x13   : > { %p760_p5 = scmp.lt.u32.totalorder %s753_s29, %s1115_s1 }
  0x14   : > { %p755_p13 = pneg %p962_p11 }
  0x16   : > { %p756_p0 = pnand %p755_p13, %p754_p12 }
  0x18   : > { %p757_p3 = pneg %p756_p0 }
  0x1a   : > { %p762_p7 = pnand %p760_p5, %p757_p3 }
  0x1c   : > { %765 = shalt.err (!%p762_p7)
}
  0x1d   : > { %s766_s7 = scalar_lea.vmem %s955_s22, 3072  ;;  %p774_p2 = scmp.lt.s32.totalorder %s955_s22, %s955_s22 }
  0x1e   : > { %p767_p9 = scmp.ne.s32.totalorder %s955_s22, %s766_s7  ;;  %p775_p6 = scmp.lt.s32.totalorder %s766_s7, %s766_s7 }
  0x20   : > { %p769_p10 = pnand %p767_p9, %p755_p13  ;;  %p776_p4 = por %p775_p6, %p774_p2 }
  0x22   : > { %p770_p1 = pneg %p769_p10 }
  0x24   : > { %p777_p8 = pnand %p776_p4, %p770_p1 }
  0x26   : > { %780 = shalt.err (!%p777_p8)
}
  0x27   : > { %s884_s8 = smov 192   ;;  %s885_s9 = smov 12  }
  0x28   : > { %664 = dma.hbm_to_vmem [thread:$0]  (!%p962_p11), %s1115_s1, 3072, %s955_s22, [#allocation6], %s884_s8, %s884_s8, %s885_s9  }
  0x29   : > { %p25_p2 = scmp.eq.s32.totalorder %s24_s26, 0  ;;  %p34_p1 = scmp.ne.s32.totalorder %s877_s14, %s873_s13 }
  0x2a   : > { %p35_p4 = scmp.eq.s32.totalorder %s881_s15, 0  ;;  %p674_p6 = scmp.lt.s32.totalorder %s881_s15, 2 }
  0x2b   : > { %s998_s17 = scalar_select %p25_p2, %s877_s14, %s27_s25  }
  0x2c   : > { %p36_p8 = por %p35_p4, %p34_p1  ;;  %p1125_p10 = scmp.eq.s32.totalorder %s932_s16, 1 }
  0x2d   : > { %s148_s27 = sand.u32 1, %s877_s14   ;;  %s591_s28 = sshll.u32 %s881_s15, 6 }
  0x2e   : > { %p1002_p12 = por %p1125_p10, %p34_p1  ;;  %s590_s29 = sshll.u32 %s148_s27, 2 }
  0x2f   : > { %s1011_s4 = scalar_lea.hbm %s1114_s0, %s591_s28  ;;  %s152_s22 = scalar_lea.vmem [#allocation2], %s590_s29 }
  0x30   : > { %s159_s25 = sshll.u32 %s152_s22, 4  ;;  %p1013_p11 = pnand %p674_p6, %p36_p8  ;;  %s1017_s25 = int_to_ptr.vmem [resolvable:$true] %s159_s25 }
  0x31   : > { %s149_s5 = scalar_lea.sflag [#allocation3], %s148_s27  ;;  %s781_s6 = scalar_lea.hbm %s1011_s4, 64 }
  0x32   : > { %p782_p13 = scmp.ne.s32.totalorder %s1011_s4, %s781_s6  ;;  %p783_p0 = pneg %p1013_p11 }
  0x33   : > { %s786_s9 = scalar_lea.hbm %s1114_s0, 128  ;;  %p787_p7 = scmp.lt.u32.totalorder %s1011_s4, %s1114_s0 }
  0x34   : > { %p784_p3 = pnand %p783_p0, %p782_p13  ;;  %p788_p9 = scmp.lt.u32.totalorder %s786_s9, %s781_s6 }
  0x35   : > { %p790_p1 = scmp.lt.u32.totalorder %s781_s6, %s1011_s4 }
  0x36   : > { %p785_p5 = pneg %p784_p3  ;;  %p789_p2 = por %p788_p9, %p787_p7 }
  0x38   : > { %p791_p4 = por %p790_p1, %p789_p2 }
  0x3a   : > { %p792_p6 = pnand %p791_p4, %p785_p5 }
  0x3c   : > { %795 = shalt.err (!%p792_p6)
}
  0x3d   : > { %s796_s27 = scalar_lea.vmem %s1017_s25, 64  ;;  %s886_s28 = smov [#allocation2]  }
  0x3e   : > { %p797_p8 = scmp.ne.s32.totalorder %s1017_s25, %s796_s27  ;;  %s801_s29 = sshll.u32 %s886_s28, 4  ;;  %s802_s29 = int_to_ptr.vmem [resolvable:$false] %s801_s29 }
  0x3f   : > { %s803_s23 = scalar_lea.vmem %s802_s29, 128  ;;  %p804_p3 = scmp.lt.s32.totalorder %s1017_s25, %s802_s29 }
  0x40   : > { %p799_p10 = pnand %p797_p8, %p783_p0  ;;  %p805_p7 = scmp.lt.s32.totalorder %s803_s23, %s796_s27 }
  0x42   : > { %p800_p13 = pneg %p799_p10  ;;  %p806_p9 = por %p805_p7, %p804_p3 }
  0x44   : > { %p807_p2 = pnand %p806_p9, %p800_p13 }
  0x46   : > { %810 = shalt.err (!%p807_p2)
}
  0x47   : > { %668 = dma.hbm_to_vmem [thread:$0]  (!%p1013_p11), %s1011_s4, 64, %s1017_s25, %s149_s5  }
  0x48   : > { %p1128_p5 = scmp.ne.s32.totalorder %s1123_s20, 0 }
  0x49   : > { %s1047_s30 = sand.u32 (!%p1128_p5), 1, %s873_s13   ;;  %p1129_p0 = scmp.ne.s32.totalorder (!%p1128_p5), %s1121_s18, 0 }
  0x4a   : > { %168 = sbr.rel (%p1128_p5) target bundleno = 374 (0x176), region = 32  ;;  %s593_s22 = sshll.u32 (!%p1128_p5), %s1047_s30, 2 }
  0x4b   : > { %s171_s6 = scalar_lea.sflag (!%p1128_p5), [#allocation3], %s1047_s30  ;;  %s1051_s7 = scalar_lea.vmem (!%p1128_p5), [#allocation2], %s593_s22 }
  0x51   : > { %856 = dma.done.wait (%p1129_p0), %s171_s6, 64  }
  0x52   : > { %858 = vsyncadd (%p1129_p0), %s171_s6, 4294967232  ;;  %p1130_p11 = scmp.eq.s32.totalorder %s932_s16, 0 }
  0x54   : > { %860 = dma.done.wait (%p1130_p11), [#allocation6], 3072   ;;  %p1131_p1 = pmov %p1130_p11 }
  0x55   : > { %v887_v0 = vmov 0.0   ;;  %vm888_vm0 = vmmov 0   ;;  %v889_v1 = vmov 0   ;;  %v715_v2 = vld [vmem:[#allocation5 + $0x4] ss:$12 sps:$4 sm:$0xff]   ;;  %v237_v27 = vlaneseq  ;;  %s651_s4 = smul.u32 24, %s1047_s30 }
  0x56   : > { %862 = vsyncadd (%p1131_p1), [#allocation6], 4294964224  ;;  %631 = vmatprep.subr.bf16.mxu1 %v887_v0  ;;  %647 = vmatprep.mubr.msk.bf16.mxu1 %vm888_vm0, %v887_v0  ;;  %v717_v3 = vld [vmem:[#allocation5 + $0x8] ss:$12 sps:$4 sm:$0xff]   ;;  %v718_v4 = vld [vmem:[#allocation5] ss:$12 sps:$4 sm:$0xff]  }
  0x57   : > { %412 = vmatprep.mubr.bf16.mxu0 %v889_v1  ;;  %380 = vmatprep.subr.bf16.mxu0 %v715_v2  ;;  %v719_v5 = vld [vmem:[#allocation5 + $0x1c] ss:$12 sps:$4 sm:$0xff]   ;;  %v721_v6 = vld [vmem:[#allocation5 + $0x20] ss:$12 sps:$4 sm:$0xff]   ;;  %v722_v7 = vld [vmem:[#allocation5 + $0x18] ss:$12 sps:$4 sm:$0xff]  }
  0x58   : > { %632 = vmatpush3.bf16.msra.mxu1 %v717_v3  ;;  %381 = vmatpush1.bf16.msra.mxu0 %v718_v4  ;;  %v723_v8 = vld [vmem:[#allocation5 + $0x34] ss:$12 sps:$4 sm:$0xff]   ;;  %v725_v9 = vld [vmem:[#allocation5 + $0x38] ss:$12 sps:$4 sm:$0xff]   ;;  %v726_v10 = vld [vmem:[#allocation5 + $0x30] ss:$12 sps:$4 sm:$0xff]  }
  0x59   : > { %633 = vmatprep.subr.bf16.mxu1 %v887_v0  ;;  %382 = vmatprep.subr.bf16.mxu0 %v719_v5  ;;  %v727_v11 = vld [vmem:[#allocation5 + $0x4c] ss:$12 sps:$4 sm:$0xff]   ;;  %v729_v12 = vld [vmem:[#allocation5 + $0x50] ss:$12 sps:$4 sm:$0xff]   ;;  %v730_v13 = vld [vmem:[#allocation5 + $0x48] ss:$12 sps:$4 sm:$0xff]  }
  0x5a   : > { %v731_v14 = vld [vmem:[#allocation5 + $0x64] ss:$12 sps:$4 sm:$0xff]   ;;  %v733_v15 = vld [vmem:[#allocation5 + $0x68] ss:$12 sps:$4 sm:$0xff]   ;;  %v734_v16 = vld [vmem:[#allocation5 + $0x60] ss:$12 sps:$4 sm:$0xff]  }
  0x5b   : > { %v735_v17 = vld [vmem:[#allocation5 + $0x7c] ss:$12 sps:$4 sm:$0xff]   ;;  %v737_v18 = vld [vmem:[#allocation5 + $0x80] ss:$12 sps:$4 sm:$0xff]   ;;  %v738_v19 = vld [vmem:[#allocation5 + $0x78] ss:$12 sps:$4 sm:$0xff]  }
  0x5c   : > { %634 = vmatpush3.bf16.msra.mxu1 %v721_v6  ;;  %383 = vmatpush1.bf16.msra.mxu0 %v722_v7  ;;  %v739_v20 = vld [vmem:[#allocation5 + $0x94] ss:$12 sps:$4 sm:$0xff]   ;;  %v741_v21 = vld [vmem:[#allocation5 + $0x98] ss:$12 sps:$4 sm:$0xff]   ;;  %v742_v22 = vld [vmem:[#allocation5 + $0x90] ss:$12 sps:$4 sm:$0xff]  }
  0x5d   : > { %635 = vmatprep.subr.bf16.mxu1 %v887_v0  ;;  %384 = vmatprep.subr.bf16.mxu0 %v723_v8  ;;  %v743_v23 = vld [vmem:[#allocation5 + $0xac] ss:$12 sps:$4 sm:$0xff]   ;;  %v745_v24 = vld [vmem:[#allocation5 + $0xb0] ss:$12 sps:$4 sm:$0xff]   ;;  %v746_v25 = vld [vmem:[#allocation5 + $0xa8] ss:$12 sps:$4 sm:$0xff]  }
  0x5e   : > { %v202_v26 = vld [vmem:[%s1051_s7] sm:$0xf]  ;;  %v238_v28 = vshrl.u32 %v237_v27, 7  ;;  %s652_s25 = smul.u32 384, %s932_s16  ;;  %s200_s26 = scalar_lea.vmem [#allocation7], %s651_s4 }
  0x5f   : > { %v235_v30 = vld [vmem:[%s1116_s2] sm:$0x7]  ;;  %s506_s5 = sshll.u32 %s200_s26, 4  ;;  %s492_s16 = scalar_lea.sflag [#allocation4], %s1047_s30  ;;  %s1072_s5 = int_to_ptr.vmem [resolvable:$true] %s506_s5 }
  0x60   : > { %636 = vmatpush3.bf16.msra.mxu1 %v725_v9  ;;  %385 = vmatpush1.bf16.msra.mxu0 %v726_v10  ;;  %v247_v29 = vsub.s32 2, %v238_v28  ;;  %v239_v31 = vsub.s32 0, %v238_v28  ;;  %v243_v32 = vsub.s32 1, %v238_v28  ;;  %s1070_s10 = scalar_lea.hbm %s1117_s3, %s652_s25  ;;  %s811_s11 = scalar_lea.vmem %s1072_s5, 384 }
  0x61   : > { %637 = vmatprep.subr.bf16.mxu1 %v887_v0  ;;  %386 = vmatprep.subr.bf16.mxu0 %v727_v11  ;;  %p812_p4 = scmp.ne.s32.totalorder %s1072_s5, %s811_s11  ;;  %s890_s27 = smov [#allocation7]  }
  0x62   : > { %v248_v33 = vrot.slane %v235_v30, %v247_v29  ;;  %v240_v34 = vrot.slane %v235_v30, %v239_v31  ;;  %v244_v35 = vrot.slane %v235_v30, %v243_v32  ;;  %s815_s28 = sshll.u32 %s890_s27, 4  ;;  %s816_s28 = int_to_ptr.vmem [resolvable:$false] %s815_s28 }
  0x63   : > { %p813_p6 = pnand %p812_p4, %p1002_p12  ;;  %s817_s29 = scalar_lea.vmem %s816_s28, 768 }
  0x64   : > { %638 = vmatpush3.bf16.msra.mxu1 %v729_v12  ;;  %387 = vmatpush1.bf16.msra.mxu0 %v730_v13  ;;  %p818_p10 = scmp.lt.s32.totalorder %s1072_s5, %s816_s28  ;;  %p819_p13 = scmp.lt.s32.totalorder %s817_s29, %s811_s11 }
  0x65   : > { %639 = vmatprep.subr.bf16.mxu1 %v887_v0  ;;  %388 = vmatprep.subr.bf16.mxu0 %v731_v14  ;;  %p814_p8 = pneg %p813_p6 }
  0x66   : > { %p820_p3 = por %p819_p13, %p818_p10 }
  0x68   : > { %640 = vmatpush3.bf16.msra.mxu1 %v733_v15  ;;  %389 = vmatpush1.bf16.msra.mxu0 %v734_v16  ;;  %p821_p7 = pnand %p820_p3, %p814_p8 }
  0x69   : > { %641 = vmatprep.subr.bf16.mxu1 %v887_v0  ;;  %390 = vmatprep.subr.bf16.mxu0 %v735_v17 }
  0x6c   : > { %642 = vmatpush3.bf16.msra.mxu1 %v737_v18  ;;  %391 = vmatpush1.bf16.msra.mxu0 %v738_v19 }
  0x6d   : > { %643 = vmatprep.subr.bf16.mxu1 %v887_v0  ;;  %392 = vmatprep.subr.bf16.mxu0 %v739_v20 }
  0x70   : > { %644 = vmatpush3.bf16.msra.mxu1 %v741_v21  ;;  %393 = vmatpush1.bf16.msra.mxu0 %v742_v22 }
  0x71   : > { %645 = vmatprep.subr.bf16.mxu1 %v887_v0  ;;  %394 = vmatprep.subr.bf16.mxu0 %v743_v23 }
  0x74   : > { %646 = vmatpush3.bf16.msra.mxu1 %v745_v24  ;;  %395 = vmatpush1.bf16.msra.mxu0 %v746_v25 }
  0x77   : > { %648 = vmatmul.mubr.bf16.vlgmr.msra.gmra.mrb[0].mxu1 %v202_v26  ;;  %413 = vmatmul.mubr.bf16.vlgmr.msra.gmra.mrb[0].mxu0 %v202_v26 }
 0x14a   : > { %v455_v36 = vpop.f32.mrb[0].mxu1  ;;  %v414_v38 = vpop.f32.mrb[0].mxu0 }
 0x14b   : > { %v456_v37 = vadd.f32 %v455_v36, %v248_v33  ;;  %v649_v39 = vpop.f32.mrb[1].mxu1  ;;  %v415_v40 = vadd.f32 %v414_v38, %v240_v34  ;;  %v416_v41 = vpop.f32.mrb[1].mxu0 }
 0x14c   : > { %v458_v42 = vpop.f32.mrb[2].mxu1  ;;  %v417_v44 = vadd.f32 %v416_v41, %v244_v35  ;;  %v418_v45 = vpop.f32.mrb[2].mxu0 }
 0x14d   : > { %v466_v43 = vmul.f32 0.044715, %v456_v37  ;;  %v650_v46 = vpop.f32.mrb[3].mxu1  ;;  %v464_v47 = vmul.f32 0.044715, %v415_v40  ;;  %v419_v48 = vpop.f32.mrb[3].mxu0 }
 0x14e   : > { %v465_v50 = vmul.f32 0.044715, %v417_v44  ;;  %v463_v0 = vmul.f32 0.5, %v456_v37  ;;  %v461_v3 = vmul.f32 0.5, %v415_v40  ;;  %v462_v6 = vmul.f32 0.5, %v417_v44 }
 0x14f   : > { %v469_v49 = vmul.f32 %v466_v43, %v456_v37  ;;  %v467_v51 = vmul.f32 %v464_v47, %v415_v40 }
 0x150   : > { %v468_v53 = vmul.f32 %v465_v50, %v417_v44 }
 0x151   : > { %v472_v52 = vmul.f32 %v469_v49, %v456_v37  ;;  %v470_v54 = vmul.f32 %v467_v51, %v415_v40 }
 0x152   : > { %v471_v56 = vmul.f32 %v468_v53, %v417_v44 }
 0x153   : > { %v475_v55 = vadd.f32 %v472_v52, %v456_v37  ;;  %v473_v57 = vadd.f32 %v470_v54, %v415_v40 }
 0x154   : > { %v474_v59 = vadd.f32 %v471_v56, %v417_v44 }
 0x155   : > { %v478_v58 = vmul.f32 0.7978845, %v475_v55  ;;  %v476_v60 = vmul.f32 0.7978845, %v473_v57 }
 0x156   : > { %v477_v61 = vmul.f32 0.7978845, %v474_v59 }
 0x157   : > { %747 = vtanh.f32 %v478_v58 }
 0x158   : > { %749 = vtanh.f32 %v476_v60 }
 0x159   : > { %751 = vtanh.f32 %v477_v61 }
 0x161   : > { %v748_v62 = vpop.eup %747 }
 0x162   : > { %v750_v63 = vpop.eup %749  ;;  %v484_v1 = vadd.f32 1.0, %v748_v62 }
 0x163   : > { %v752_v2 = vpop.eup %751  ;;  %v482_v4 = vadd.f32 1.0, %v750_v63 }
 0x164   : > { %v487_v5 = vmul.f32 %v484_v1, %v463_v0  ;;  %v483_v7 = vadd.f32 1.0, %v752_v2 }
 0x165   : > { %v485_v8 = vmul.f32 %v482_v4, %v461_v3 }
 0x166   : > { %v486_v9 = vmul.f32 %v483_v7, %v462_v6  ;;  %490 = vst [vmem:[%s200_s26 + $0x10] sm:$0xff] %v487_v5 }
 0x167   : > { %488 = vst [vmem:[%s200_s26] sm:$0xff] %v485_v8 }
 0x168   : > { %489 = vst [vmem:[%s200_s26 + $0x8] sm:$0xff] %v486_v9 }
 0x169   : > { %824 = shalt.err (!%p821_p7)
}
 0x16a   : > { %s825_s23 = scalar_lea.hbm %s1070_s10, 384  ;;  %s829_s6 = scalar_lea.hbm %s1117_s3, 768 }
 0x16b   : > { %p826_p9 = scmp.ne.s32.totalorder %s1070_s10, %s825_s23  ;;  %p830_p0 = scmp.lt.u32.totalorder %s1070_s10, %s1117_s3 }
 0x16c   : > { %p831_p11 = scmp.lt.u32.totalorder %s829_s6, %s825_s23  ;;  %p833_p4 = scmp.lt.u32.totalorder %s825_s23, %s1070_s10 }
 0x16d   : > { %p827_p2 = pnand %p826_p9, %p1002_p12 }
 0x16e   : > { %p832_p1 = por %p831_p11, %p830_p0 }
 0x16f   : > { %p828_p5 = pneg %p827_p2 }
 0x170   : > { %p834_p6 = por %p833_p4, %p832_p1 }
 0x172   : > { %p835_p8 = pnand %p834_p6, %p828_p5 }
 0x174   : > { %838 = shalt.err (!%p835_p8)
}
 0x175   : > { %659 = dma.vmem_to_hbm [thread:$0]  (%p1002_p12), %s1072_s5, 384, %s1070_s10, %s492_s16  }
 0x176 PF: > { %s518_s20 = sand.u32 1, %s869_s12   ;;  %p1132_p10 = scmp.ne.s32.totalorder %s1122_s19, 0 }
 0x177   : > { %p1133_p13 = scmp.ge.s32.totalorder %s881_s15, 2  ;;  %s519_s4 = scalar_lea.sflag [#allocation4], %s518_s20 }
 0x179   : > { %p670_p3 = pnand %p1133_p13, %p1132_p10 }
 0x17b   : > { %864 = dma.done.wait (!%p670_p3), %s519_s4, 384  }
 0x17c   : > { %866 = vsyncadd (!%p670_p3), %s519_s4, 4294966912  ;;  %p17_p7 = scmp.ge.s32.totalorder %s967_s24, 4   ;;  %s1134_s12 = smov %s873_s13 }
 0x17d   : > { %s1135_s13 = smov %s877_s14  ;;  %s1136_s14 = smov %s998_s17 }
 0x17e   : > { %s1137_s15 = smov %s967_s24  ;;  %19 = sbr.rel (!%p17_p7) target bundleno = 6 (0x6), region = 81 }
 0x185   :  { %524 = vsyncpa [#allocation3], 1 }
 0x186   :  { %526 = vsyncpa [#allocation3 + $0x1], 1 }
 0x187   :  { %527 = vsyncpa [#allocation6], 1 }
 0x188   :  { %528 = vsyncpa [#allocation4], 1 }
 0x189   :  { %530 = vsyncpa [#allocation4 + $0x1], 1 }

</bundles_post_ra>
